<compile_context>
chip_gen: v6e
topology: v6e:2x2x1
jax: 0.10.0
libtpu: 0.0.40
codegen_flags: <defaults>
</compile_context>

<pallas_src>
import functools

import jax
import jax.numpy as jnp
from jax.experimental import pallas as pl
from jax.experimental.pallas import tpu as pltpu


def _unlikelihood_kernel(logits_ref, labwin_ref, ce_ref, cnt_ref, u_ref,
                         m_scr, s_scr, *, ignore_index, eps, window, full_v):
    ph = pl.program_id(1)   # 0: online max/denominator pass, 1: loss pass
    vt = pl.program_id(2)   # vocab-tile index

    @pl.when(jnp.logical_and(ph == 0, vt == 0))
    def _init():
        ce_ref[...] = jnp.zeros_like(ce_ref)
        cnt_ref[...] = jnp.zeros_like(cnt_ref)
        u_ref[...] = jnp.zeros_like(u_ref)
        m_scr[...] = jnp.full_like(m_scr, -jnp.inf)
        s_scr[...] = jnp.zeros_like(s_scr)

    x = logits_ref[0].astype(jnp.float32)          # (T, tV) f32 compute
    T, tV = x.shape

    # ---------------- pass 0: online softmax statistics over V tiles ---------
    @pl.when(ph == 0)
    def _pass_stats():
        m_old = m_scr[...]
        m_new = jnp.maximum(m_old, jnp.max(x, axis=-1, keepdims=True))
        s_scr[...] = (s_scr[...] * jnp.exp(m_old - m_new)
                      + jnp.sum(jnp.exp(x - m_new), axis=-1, keepdims=True))
        m_scr[...] = m_new

    # ---------------- pass 1: CE + unlikelihood, per V tile -------------------
    @pl.when(ph == 1)
    def _pass_loss():
        lab = labwin_ref[0, 0]                     # (T, 1) current labels
        m = m_scr[...]                             # (T, 1) final max
        s = s_scr[...]                             # (T, 1) final denominator
        z = x - m                                  # (T, tV)

        base = vt * tV
        gid = base + jax.lax.broadcasted_iota(jnp.int32, (T, tV), 1)  # global vocab id
        eq0 = gid == lab                           # onehot(labels) restricted to this tile
        eq0_f = eq0.astype(jnp.float32)
        valid = (lab != ignore_index).astype(jnp.float32)             # (T, 1)

        # ---- label-smoothed cross entropy, without materializing log-softmax:
        # ce_tok = -(1-eps)*(z_t - log s) - (eps/V)*(sum_v z - V*log s)
        #        = -(1-eps)*z_t - (eps/V)*sum_v z + log s
        tgt_z = jnp.sum(z * eq0_f, axis=-1, keepdims=True)            # (T, 1)
        sum_z = jnp.sum(z, axis=-1, keepdims=True)                    # (T, 1)
        ce_part = -(1.0 - eps) * tgt_z - (eps / full_v) * sum_z
        ce_ref[...] += jnp.sum(ce_part * valid, keepdims=True)

        @pl.when(vt == 0)
        def _once_per_row():                       # per-row terms, added once
            ce_ref[...] += jnp.sum(jnp.log(s) * valid, keepdims=True)
            cnt_ref[...] += jnp.sum(valid, keepdims=True)

        # ---- unlikelihood candidates ----
        W = labwin_ref.shape[1]
        cand = None
        if window > 0 and W > 1:
            # candidate iff some previous label in the window matches this vocab
            # id; labwin[:, d] holds labels shifted down by d rows (-1 = invalid)
            prev_any = None
            for d in range(1, W):
                eq_d = gid == labwin_ref[0, d]
                prev_any = eq_d if prev_any is None else jnp.logical_or(prev_any, eq_d)
            cand = jnp.logical_and(
                prev_any, jnp.logical_and(gid != 0, jnp.logical_not(eq0)))
        elif window <= 0:
            # full-prefix fallback: lower-triangular (T,T) mask on the MXU in
            # bf16 (exact for 0/1 values, f32 accumulation)
            row2 = jax.lax.broadcasted_iota(jnp.int32, (T, T), 0)
            col2 = jax.lax.broadcasted_iota(jnp.int32, (T, T), 1)
            mask_bf = (col2 <= row2).astype(jnp.bfloat16)
            counts = jnp.dot(mask_bf, eq0.astype(jnp.bfloat16),
                             preferred_element_type=jnp.float32)
            cand = jnp.logical_and(counts > 0.5,
                                   jnp.logical_and(gid != 0, jnp.logical_not(eq0)))
        # window == 1: the only windowed token is the current target, which is
        # always excluded -> no candidates, nothing to accumulate.

        if cand is not None:
            inv_s = pl.reciprocal(s, approx=False)   # (T,1) on the EUP
            p = jnp.exp(z) * inv_s                   # softmax, no (T,tV) divide
            inner = jnp.maximum(1.0 - p, 1e-5)
            u_ref[...] += jnp.sum(jnp.where(cand, -jnp.log(inner), 0.0),
                                  keepdims=True)


def _pick_tile_v(V, max_tile=512):
    """Largest multiple of 128 that divides V and is <= max_tile (else V)."""
    if V <= max_tile:
        return V
    for t in range(max_tile, 0, -128):
        if t % 128 == 0 and V % t == 0:
            return t
    return V


def unlikelihood_loss(logits, labels, *, ignore_index, label_smoothing_epsilon,
                      unlikelihood_alpha, unlikelihood_window_size,
                      tile_v=None, vmem_limit_bytes=32 * 1024 * 1024):
    B, T, V = logits.shape
    eps = float(label_smoothing_epsilon)
    window = int(unlikelihood_window_size)

    labels_i32 = labels.astype(jnp.int32)

    # labwin[b, d, i, 0] = labels[b, i - d]  (or -1 where i - d < 0, which can
    # never match a vocab id).  d = 0 is the current label; d = 1..W-1 are the
    # previous tokens inside the unlikelihood window.
    W = min(window, T) if window > 0 else 1
    cols = [labels_i32]
    for d in range(1, W):
        pad = jnp.full((B, d), -1, jnp.int32)
        cols.append(jnp.concatenate([pad, labels_i32[:, :T - d]], axis=1))
    labwin = jnp.stack(cols, axis=1)[..., None]            # (B, W, T, 1)

    if tile_v is None:
        tile_v = _pick_tile_v(V)
    assert V % tile_v == 0, f"tile_v={tile_v} must divide V={V}"
    n_vt = V // tile_v

    kernel = functools.partial(
        _unlikelihood_kernel,
        ignore_index=ignore_index, eps=eps, window=window, full_v=V,
    )

    # TODO(synk): for very long sequences (T >> 2048) the T axis should also be
    # tiled; the current kernel keeps a full (T, tile_v) slab per grid step.
    ce_p, cnt_p, u_p = pl.pallas_call(
        kernel,
        out_shape=(
            jax.ShapeDtypeStruct((B, 1, 128), jnp.float32),
            jax.ShapeDtypeStruct((B, 1, 128), jnp.float32),
            jax.ShapeDtypeStruct((B, 1, 128), jnp.float32),
        ),
        grid_spec=pltpu.PrefetchScalarGridSpec(
            num_scalar_prefetch=0,
            grid=(B, 2, n_vt),
            in_specs=[
                pl.BlockSpec((1, T, tile_v), lambda b, ph, vt: (b, 0, vt)),
                # constant block index over (ph, vt) -> DMA'd once per batch
                pl.BlockSpec((1, W, T, 1), lambda b, ph, vt: (b, 0, 0, 0)),
            ],
            out_specs=[
                pl.BlockSpec((1, 1, 128), lambda b, ph, vt: (b, 0, 0)),
                pl.BlockSpec((1, 1, 128), lambda b, ph, vt: (b, 0, 0)),
                pl.BlockSpec((1, 1, 128), lambda b, ph, vt: (b, 0, 0)),
            ],
            scratch_shapes=[
                pltpu.VMEM((T, 1), jnp.float32),   # running row max
                pltpu.VMEM((T, 1), jnp.float32),   # running softmax denominator
            ],
        ),
        compiler_params=pltpu.CompilerParams(
            dimension_semantics=("parallel", "arbitrary", "arbitrary"),
            vmem_limit_bytes=vmem_limit_bytes,
        ),
    )(logits, labwin)          # NOTE: no host-side f32 cast of the logits

    ce_l = jnp.sum(ce_p[:, 0, 0]) / jnp.sum(cnt_p[:, 0, 0])
    u_l = jnp.log(1.0 + jnp.sum(u_p[:, 0, 0]) / B)
    return ce_l + unlikelihood_alpha * u_l


def reference_loss(logits, labels, *, ignore_index, eps, alpha, window):
    """Pure-JAX mirror of the PyTorch forward (for verification)."""
    B, T, V = logits.shape
    logits = logits.astype(jnp.float32)
    logp = jax.nn.log_softmax(logits, axis=-1)
    valid = (labels != ignore_index).astype(jnp.float32)
    tgt_logp = jnp.take_along_axis(logp, labels[..., None], axis=-1)[..., 0]
    ce_tok = -(1.0 - eps) * tgt_logp - (eps / V) * logp.sum(-1)
    ce_l = jnp.sum(ce_tok * valid) / jnp.sum(valid)

    cand = jnp.broadcast_to(labels[:, None, :], (B, T, T))   # cand[b,i,j]=labels[b,j]
    row = jnp.arange(T)[:, None]
    col = jnp.arange(T)[None, :]
    mask = col <= row
    if window > 0:
        mask = mask & (col >= row - (window - 1))
    cand = cand * mask.astype(cand.dtype)
    cand = jnp.where(cand == labels[:, :, None], 0, cand)
    ct = jax.vmap(jax.vmap(lambda c: jnp.zeros((V,), jnp.float32).at[c].set(1.0)))(cand)
    ct = ct.at[..., 0].set(0.0)
    p = jax.nn.softmax(logits, axis=-1)
    inner = jnp.clip(1.0 - p, 1e-5)
    u_l = jnp.log(1.0 + (-jnp.log(inner) * ct).sum() / B)
    return ce_l + alpha * u_l


if __name__ == "__main__":
    B, T, V = 2, 16, 512
    ignore_index = 0
    eps = 0.1
    alpha = 1.0
    window = 4

    key = jax.random.PRNGKey(0)
    k1, k2 = jax.random.split(key)
    logits = jax.random.normal(k1, (B, T, V), dtype=jnp.float32)
    labels = jax.random.randint(k2, (B, T), 0, V, dtype=jnp.int32)

    # 1) f32 logits, windowed path, two vocab tiles (exercises the 2-pass softmax)
    loss = unlikelihood_loss(
        logits, labels, ignore_index=ignore_index, label_smoothing_epsilon=eps,
        unlikelihood_alpha=alpha, unlikelihood_window_size=window, tile_v=256)
    loss = jax.block_until_ready(loss)
    ref = reference_loss(logits, labels, ignore_index=ignore_index, eps=eps,
                         alpha=alpha, window=window)
    assert jnp.allclose(loss, ref, rtol=1e-4, atol=1e-4), (loss, ref)

    # 2) bf16 logits straight into the kernel (half the DMA bytes), f32 math inside
    logits_bf16 = logits.astype(jnp.bfloat16)
    loss_bf = unlikelihood_loss(
        logits_bf16, labels, ignore_index=ignore_index, label_smoothing_epsilon=eps,
        unlikelihood_alpha=alpha, unlikelihood_window_size=window, tile_v=256)
    loss_bf = jax.block_until_ready(loss_bf)
    ref_bf = reference_loss(logits_bf16.astype(jnp.float32), labels,
                            ignore_index=ignore_index, eps=eps, alpha=alpha,
                            window=window)
    assert jnp.allclose(loss_bf, ref_bf, rtol=1e-3, atol=1e-3), (loss_bf, ref_bf)

    # 3) window <= 0 (full prefix) -> bf16 MXU matmul fallback path
    loss0 = unlikelihood_loss(
        logits, labels, ignore_index=ignore_index, label_smoothing_epsilon=eps,
        unlikelihood_alpha=alpha, unlikelihood_window_size=0, tile_v=256)
    loss0 = jax.block_until_ready(loss0)
    ref0 = reference_loss(logits, labels, ignore_index=ignore_index, eps=eps,
                          alpha=alpha, window=0)
    assert jnp.allclose(loss0, ref0, rtol=1e-4, atol=1e-4), (loss0, ref0)

    print("KERNEL_OK")
</pallas_src>

<mosaic_0001>
module attributes {stable_mosaic.version = 11 : i64} {
  func.func @_unlikelihood_kernel(%arg0: i32, %arg1: i32, %arg2: i32, %arg3: memref<1x16x256xf32, #tpu.memory_space<vmem>>, %arg4: memref<1x4x16x1xi32, #tpu.memory_space<vmem>>, %arg5: memref<1x1x128xf32, #tpu.memory_space<vmem>>, %arg6: memref<1x1x128xf32, #tpu.memory_space<vmem>>, %arg7: memref<1x1x128xf32, #tpu.memory_space<vmem>>, %arg8: memref<16x1xf32, #tpu.memory_space<vmem>>, %arg9: memref<16x1xf32, #tpu.memory_space<vmem>>) attributes {dimension_semantics = [#tpu.dimension_semantics<parallel>, #tpu.dimension_semantics<arbitrary>, #tpu.dimension_semantics<arbitrary>], iteration_bounds = array<i64: 2, 2, 2>, scalar_prefetch = 0 : i64, scratch_operands = 2 : i64, tpu.core_type = #tpu.core_type<tc>, window_params = [{transform_indices = @transform_0, window_bounds = array<i64: 1, 16, 256>}, {transform_indices = @transform_1, window_bounds = array<i64: 1, 4, 16, 1>}, {transform_indices = @transform_2, window_bounds = array<i64: 1, 1, 128>}, {transform_indices = @transform_3, window_bounds = array<i64: 1, 1, 128>}, {transform_indices = @transform_4, window_bounds = array<i64: 1, 1, 128>}]} {
    %c0_i32 = arith.constant 0 : i32
    %0 = arith.cmpi eq, %arg1, %c0_i32 : i32
    %c0_i32_0 = arith.constant 0 : i32
    %1 = arith.cmpi eq, %arg2, %c0_i32_0 : i32
    %2 = arith.andi %0, %1 : i1
    %3 = arith.extui %2 : i1 to i32
    %c0_i32_1 = arith.constant 0 : i32
    %4 = arith.cmpi ne, %3, %c0_i32_1 : i32
    scf.if %4 {
      %cst = arith.constant 0.000000e+00 : f32
      %13 = vector.broadcast %cst : f32 to vector<1x1x128xf32>
      %c0_7 = arith.constant 0 : index
      %c0_8 = arith.constant 0 : index
      %c0_9 = arith.constant 0 : index
      %14 = vector.load %arg5[%c0_7, %c0_8, %c0_9] : memref<1x1x128xf32, #tpu.memory_space<vmem>>, vector<1x1x128xf32>
      tpu.vector_store %arg5[%c0_7, %c0_8, %c0_9], %13 {strides = array<i32>} : memref<1x1x128xf32, #tpu.memory_space<vmem>>, vector<1x1x128xf32>,
      %cst_10 = arith.constant 0.000000e+00 : f32
      %15 = vector.broadcast %cst_10 : f32 to vector<1x1x128xf32>
      %c0_11 = arith.constant 0 : index
      %c0_12 = arith.constant 0 : index
      %c0_13 = arith.constant 0 : index
      %16 = vector.load %arg6[%c0_11, %c0_12, %c0_13] : memref<1x1x128xf32, #tpu.memory_space<vmem>>, vector<1x1x128xf32>
      tpu.vector_store %arg6[%c0_11, %c0_12, %c0_13], %15 {strides = array<i32>} : memref<1x1x128xf32, #tpu.memory_space<vmem>>, vector<1x1x128xf32>,
      %cst_14 = arith.constant 0.000000e+00 : f32
      %17 = vector.broadcast %cst_14 : f32 to vector<1x1x128xf32>
      %c0_15 = arith.constant 0 : index
      %c0_16 = arith.constant 0 : index
      %c0_17 = arith.constant 0 : index
      %18 = vector.load %arg7[%c0_15, %c0_16, %c0_17] : memref<1x1x128xf32, #tpu.memory_space<vmem>>, vector<1x1x128xf32>
      tpu.vector_store %arg7[%c0_15, %c0_16, %c0_17], %17 {strides = array<i32>} : memref<1x1x128xf32, #tpu.memory_space<vmem>>, vector<1x1x128xf32>,
      %cst_18 = arith.constant 0xFF800000 : f32
      %19 = vector.broadcast %cst_18 : f32 to vector<16x1xf32>
      %c0_19 = arith.constant 0 : index
      %c0_20 = arith.constant 0 : index
      %20 = vector.load %arg8[%c0_19, %c0_20] : memref<16x1xf32, #tpu.memory_space<vmem>>, vector<16x1xf32>
      tpu.vector_store %arg8[%c0_19, %c0_20], %19 {strides = array<i32>} : memref<16x1xf32, #tpu.memory_space<vmem>>, vector<16x1xf32>,
      %cst_21 = arith.constant 0.000000e+00 : f32
      %21 = vector.broadcast %cst_21 : f32 to vector<16x1xf32>
      %c0_22 = arith.constant 0 : index
      %c0_23 = arith.constant 0 : index
      %22 = vector.load %arg9[%c0_22, %c0_23] : memref<16x1xf32, #tpu.memory_space<vmem>>, vector<16x1xf32>
      tpu.vector_store %arg9[%c0_22, %c0_23], %21 {strides = array<i32>} : memref<16x1xf32, #tpu.memory_space<vmem>>, vector<16x1xf32>,
    } else {
    }
    %c0 = arith.constant 0 : index
    %c0_2 = arith.constant 0 : index
    %c0_3 = arith.constant 0 : index
    %5 = vector.load %arg3[%c0, %c0_2, %c0_3] : memref<1x16x256xf32, #tpu.memory_space<vmem>>, vector<1x16x256xf32>
    %6 = vector.shape_cast %5 : vector<1x16x256xf32> to vector<16x256xf32>
    %c0_i32_4 = arith.constant 0 : i32
    %7 = arith.cmpi eq, %arg1, %c0_i32_4 : i32
    %8 = arith.extui %7 : i1 to i32
    %c0_i32_5 = arith.constant 0 : i32
    %9 = arith.cmpi ne, %8, %c0_i32_5 : i32
    scf.if %9 {
      %c0_7 = arith.constant 0 : index
      %c0_8 = arith.constant 0 : index
      %13 = vector.load %arg8[%c0_7, %c0_8] : memref<16x1xf32, #tpu.memory_space<vmem>>, vector<16x1xf32>
      %cst = arith.constant dense<0xFF800000> : vector<16xf32>
      %14 = vector.multi_reduction <maximumf>, %6, %cst [1] : vector<16x256xf32> to vector<16xf32>
      %15 = vector.shape_cast %14 : vector<16xf32> to vector<16x1xf32>
      %16 = arith.maximumf %13, %15 : vector<16x1xf32>
      %c0_9 = arith.constant 0 : index
      %c0_10 = arith.constant 0 : index
      %17 = vector.load %arg9[%c0_9, %c0_10] : memref<16x1xf32, #tpu.memory_space<vmem>>, vector<16x1xf32>
      %18 = arith.subf %13, %16 : vector<16x1xf32>
      %19 = math.exp %18 : vector<16x1xf32>
      %20 = arith.mulf %17, %19 : vector<16x1xf32>
      %21 = vector.broadcast %16 : vector<16x1xf32> to vector<16x256xf32>
      %22 = arith.subf %6, %21 : vector<16x256xf32>
      %23 = math.exp %22 : vector<16x256xf32>
      %cst_11 = arith.constant dense<0.000000e+00> : vector<16xf32>
      %24 = vector.multi_reduction <add>, %23, %cst_11 [1] : vector<16x256xf32> to vector<16xf32>
      %25 = vector.shape_cast %24 : vector<16xf32> to vector<16x1xf32>
      %26 = arith.addf %20, %25 : vector<16x1xf32>
      %c0_12 = arith.constant 0 : index
      %c0_13 = arith.constant 0 : index
      %27 = vector.load %arg9[%c0_12, %c0_13] : memref<16x1xf32, #tpu.memory_space<vmem>>, vector<16x1xf32>
      tpu.vector_store %arg9[%c0_12, %c0_13], %26 {strides = array<i32>} : memref<16x1xf32, #tpu.memory_space<vmem>>, vector<16x1xf32>,
      %c0_14 = arith.constant 0 : index
      %c0_15 = arith.constant 0 : index
      %28 = vector.load %arg8[%c0_14, %c0_15] : memref<16x1xf32, #tpu.memory_space<vmem>>, vector<16x1xf32>
      tpu.vector_store %arg8[%c0_14, %c0_15], %16 {strides = array<i32>} : memref<16x1xf32, #tpu.memory_space<vmem>>, vector<16x1xf32>,
    } else {
    }
    %c1_i32 = arith.constant 1 : i32
    %10 = arith.cmpi eq, %arg1, %c1_i32 : i32
    %11 = arith.extui %10 : i1 to i32
    %c0_i32_6 = arith.constant 0 : i32
    %12 = arith.cmpi ne, %11, %c0_i32_6 : i32
    scf.if %12 {
      %c0_7 = arith.constant 0 : index
      %c0_8 = arith.constant 0 : index
      %c0_9 = arith.constant 0 : index
      %c0_10 = arith.constant 0 : index
      %13 = vector.load %arg4[%c0_7, %c0_8, %c0_9, %c0_10] : memref<1x4x16x1xi32, #tpu.memory_space<vmem>>, vector<1x1x16x1xi32>
      %14 = vector.shape_cast %13 : vector<1x1x16x1xi32> to vector<16x1xi32>
      %c0_11 = arith.constant 0 : index
      %c0_12 = arith.constant 0 : index
      %15 = vector.load %arg8[%c0_11, %c0_12] : memref<16x1xf32, #tpu.memory_space<vmem>>, vector<16x1xf32>
      %c0_13 = arith.constant 0 : index
      %c0_14 = arith.constant 0 : index
      %16 = vector.load %arg9[%c0_13, %c0_14] : memref<16x1xf32, #tpu.memory_space<vmem>>, vector<16x1xf32>
      %17 = vector.broadcast %15 : vector<16x1xf32> to vector<16x256xf32>
      %18 = arith.subf %6, %17 : vector<16x256xf32>
      %c256_i32 = arith.constant 256 : i32
      %19 = arith.muli %arg2, %c256_i32 : i32
      %20 = tpu.iota {dimensions = array<i32: 1>} : vector<16x256xi32>
      %21 = vector.broadcast %19 : i32 to vector<16x256xi32>
      %22 = arith.addi %21, %20 : vector<16x256xi32>
      %23 = vector.broadcast %14 : vector<16x1xi32> to vector<16x256xi32>
      %24 = arith.cmpi eq, %22, %23 : vector<16x256xi32>
      %25 = arith.extui %24 : vector<16x256xi1> to vector<16x256xi32>
      %26 = arith.sitofp %25 : vector<16x256xi32> to vector<16x256xf32>
      %c0_i32_15 = arith.constant 0 : i32
      %27 = vector.broadcast %c0_i32_15 : i32 to vector<16x1xi32>
      %28 = arith.cmpi ne, %14, %27 : vector<16x1xi32>
      %29 = arith.extui %28 : vector<16x1xi1> to vector<16x1xi32>
      %30 = arith.sitofp %29 : vector<16x1xi32> to vector<16x1xf32>
      %31 = arith.mulf %18, %26 : vector<16x256xf32>
      %cst = arith.constant dense<0.000000e+00> : vector<16xf32>
      %32 = vector.multi_reduction <add>, %31, %cst [1] : vector<16x256xf32> to vector<16xf32>
      %33 = vector.shape_cast %32 : vector<16xf32> to vector<16x1xf32>
      %cst_16 = arith.constant dense<0.000000e+00> : vector<16xf32>
      %34 = vector.multi_reduction <add>, %18, %cst_16 [1] : vector<16x256xf32> to vector<16xf32>
      %35 = vector.shape_cast %34 : vector<16xf32> to vector<16x1xf32>
      %cst_17 = arith.constant -0.899999976 : f32
      %36 = vector.broadcast %cst_17 : f32 to vector<16x1xf32>
      %37 = arith.mulf %36, %33 : vector<16x1xf32>
      %cst_18 = arith.constant 1.95312503E-4 : f32
      %38 = vector.broadcast %cst_18 : f32 to vector<16x1xf32>
      %39 = arith.mulf %38, %35 : vector<16x1xf32>
      %40 = arith.subf %37, %39 : vector<16x1xf32>
      %c0_19 = arith.constant 0 : index
      %c0_20 = arith.constant 0 : index
      %c0_21 = arith.constant 0 : index
      %41 = vector.load %arg5[%c0_19, %c0_20, %c0_21] : memref<1x1x128xf32, #tpu.memory_space<vmem>>, vector<1x1x128xf32>
      %42 = arith.mulf %40, %30 : vector<16x1xf32>
      %43 = vector.shape_cast %42 : vector<16x1xf32> to vector<1x16x1xf32>
      %cst_22 = arith.constant dense<0.000000e+00> : vector<1xf32>
      %44 = vector.multi_reduction <add>, %43, %cst_22 [1, 2] : vector<1x16x1xf32> to vector<1xf32>
      %45 = vector.shape_cast %44 : vector<1xf32> to vector<1x1x1xf32>
      %46 = vector.extract %45[0, 0, 0] : f32 from vector<1x1x1xf32>
      %47 = vector.broadcast %46 : f32 to vector<1x1xf32>
      %48 = vector.shape_cast %47 : vector<1x1xf32> to vector<1x1x1xf32>
      %49 = vector.broadcast %48 : vector<1x1x1xf32> to vector<1x1x128xf32>
      %50 = arith.addf %41, %49 : vector<1x1x128xf32>
      %c0_23 = arith.constant 0 : index
      %c0_24 = arith.constant 0 : index
      %c0_25 = arith.constant 0 : index
      %51 = vector.load %arg5[%c0_23, %c0_24, %c0_25] : memref<1x1x128xf32, #tpu.memory_space<vmem>>, vector<1x1x128xf32>
      tpu.vector_store %arg5[%c0_23, %c0_24, %c0_25], %50 {strides = array<i32>} : memref<1x1x128xf32, #tpu.memory_space<vmem>>, vector<1x1x128xf32>,
      %c0_i32_26 = arith.constant 0 : i32
      %52 = arith.cmpi eq, %arg2, %c0_i32_26 : i32
      %53 = arith.extui %52 : i1 to i32
      %c0_i32_27 = arith.constant 0 : i32
      %54 = arith.cmpi ne, %53, %c0_i32_27 : i32
      scf.if %54 {
        %c0_50 = arith.constant 0 : index
        %c0_51 = arith.constant 0 : index
        %c0_52 = arith.constant 0 : index
        %97 = vector.load %arg5[%c0_50, %c0_51, %c0_52] : memref<1x1x128xf32, #tpu.memory_space<vmem>>, vector<1x1x128xf32>
        %98 = math.log %16 : vector<16x1xf32>
        %99 = arith.mulf %98, %30 : vector<16x1xf32>
        %100 = vector.shape_cast %99 : vector<16x1xf32> to vector<1x16x1xf32>
        %cst_53 = arith.constant dense<0.000000e+00> : vector<1xf32>
        %101 = vector.multi_reduction <add>, %100, %cst_53 [1, 2] : vector<1x16x1xf32> to vector<1xf32>
        %102 = vector.shape_cast %101 : vector<1xf32> to vector<1x1x1xf32>
        %103 = vector.extract %102[0, 0, 0] : f32 from vector<1x1x1xf32>
        %104 = vector.broadcast %103 : f32 to vector<1x1xf32>
        %105 = vector.shape_cast %104 : vector<1x1xf32> to vector<1x1x1xf32>
        %106 = vector.broadcast %105 : vector<1x1x1xf32> to vector<1x1x128xf32>
        %107 = arith.addf %97, %106 : vector<1x1x128xf32>
        %c0_54 = arith.constant 0 : index
        %c0_55 = arith.constant 0 : index
        %c0_56 = arith.constant 0 : index
        %108 = vector.load %arg5[%c0_54, %c0_55, %c0_56] : memref<1x1x128xf32, #tpu.memory_space<vmem>>, vector<1x1x128xf32>
        tpu.vector_store %arg5[%c0_54, %c0_55, %c0_56], %107 {strides = array<i32>} : memref<1x1x128xf32, #tpu.memory_space<vmem>>, vector<1x1x128xf32>,
        %c0_57 = arith.constant 0 : index
        %c0_58 = arith.constant 0 : index
        %c0_59 = arith.constant 0 : index
        %109 = vector.load %arg6[%c0_57, %c0_58, %c0_59] : memref<1x1x128xf32, #tpu.memory_space<vmem>>, vector<1x1x128xf32>
        %110 = vector.shape_cast %30 : vector<16x1xf32> to vector<1x16x1xf32>
        %cst_60 = arith.constant dense<0.000000e+00> : vector<1xf32>
        %111 = vector.multi_reduction <add>, %110, %cst_60 [1, 2] : vector<1x16x1xf32> to vector<1xf32>
        %112 = vector.shape_cast %111 : vector<1xf32> to vector<1x1x1xf32>
        %113 = vector.extract %112[0, 0, 0] : f32 from vector<1x1x1xf32>
        %114 = vector.broadcast %113 : f32 to vector<1x1xf32>
        %115 = vector.shape_cast %114 : vector<1x1xf32> to vector<1x1x1xf32>
        %116 = vector.broadcast %115 : vector<1x1x1xf32> to vector<1x1x128xf32>
        %117 = arith.addf %109, %116 : vector<1x1x128xf32>
        %c0_61 = arith.constant 0 : index
        %c0_62 = arith.constant 0 : index
        %c0_63 = arith.constant 0 : index
        %118 = vector.load %arg6[%c0_61, %c0_62, %c0_63] : memref<1x1x128xf32, #tpu.memory_space<vmem>>, vector<1x1x128xf32>
        tpu.vector_store %arg6[%c0_61, %c0_62, %c0_63], %117 {strides = array<i32>} : memref<1x1x128xf32, #tpu.memory_space<vmem>>, vector<1x1x128xf32>,
      } else {
      }
      %c0_28 = arith.constant 0 : index
      %c1 = arith.constant 1 : index
      %c0_29 = arith.constant 0 : index
      %c0_30 = arith.constant 0 : index
      %55 = vector.load %arg4[%c0_28, %c1, %c0_29, %c0_30] : memref<1x4x16x1xi32, #tpu.memory_space<vmem>>, vector<1x1x16x1xi32>
      %56 = vector.shape_cast %55 : vector<1x1x16x1xi32> to vector<16x1xi32>
      %57 = vector.broadcast %56 : vector<16x1xi32> to vector<16x256xi32>
      %58 = arith.cmpi eq, %22, %57 : vector<16x256xi32>
      %c0_31 = arith.constant 0 : index
      %c2 = arith.constant 2 : index
      %c0_32 = arith.constant 0 : index
      %c0_33 = arith.constant 0 : index
      %59 = vector.load %arg4[%c0_31, %c2, %c0_32, %c0_33] : memref<1x4x16x1xi32, #tpu.memory_space<vmem>>, vector<1x1x16x1xi32>
      %60 = vector.shape_cast %59 : vector<1x1x16x1xi32> to vector<16x1xi32>
      %61 = vector.broadcast %60 : vector<16x1xi32> to vector<16x256xi32>
      %62 = arith.cmpi eq, %22, %61 : vector<16x256xi32>
      %63 = arith.ori %58, %62 : vector<16x256xi1>
      %c0_34 = arith.constant 0 : index
      %c3 = arith.constant 3 : index
      %c0_35 = arith.constant 0 : index
      %c0_36 = arith.constant 0 : index
      %64 = vector.load %arg4[%c0_34, %c3, %c0_35, %c0_36] : memref<1x4x16x1xi32, #tpu.memory_space<vmem>>, vector<1x1x16x1xi32>
      %65 = vector.shape_cast %64 : vector<1x1x16x1xi32> to vector<16x1xi32>
      %66 = vector.broadcast %65 : vector<16x1xi32> to vector<16x256xi32>
      %67 = arith.cmpi eq, %22, %66 : vector<16x256xi32>
      %68 = arith.ori %63, %67 : vector<16x256xi1>
      %c0_i32_37 = arith.constant 0 : i32
      %69 = vector.broadcast %c0_i32_37 : i32 to vector<16x256xi32>
      %70 = arith.cmpi ne, %22, %69 : vector<16x256xi32>
      %cst_38 = arith.constant dense<true> : vector<16x256xi1>
      %71 = arith.xori %24, %cst_38 : vector<16x256xi1>
      %72 = arith.andi %70, %71 : vector<16x256xi1>
      %73 = arith.andi %68, %72 : vector<16x256xi1>
      %74 = tpu.reciprocal %16 : vector<16x1xf32> -> vector<16x1xf32>
      %75 = math.exp %18 : vector<16x256xf32>
      %76 = vector.broadcast %74 : vector<16x1xf32> to vector<16x256xf32>
      %77 = arith.mulf %75, %76 : vector<16x256xf32>
      %cst_39 = arith.constant 1.000000e+00 : f32
      %78 = vector.broadcast %cst_39 : f32 to vector<16x256xf32>
      %79 = arith.subf %78, %77 : vector<16x256xf32>
      %cst_40 = arith.constant 9.99999974E-6 : f32
      %80 = vector.broadcast %cst_40 : f32 to vector<16x256xf32>
      %81 = arith.maximumf %79, %80 : vector<16x256xf32>
      %c0_41 = arith.constant 0 : index
      %c0_42 = arith.constant 0 : index
      %c0_43 = arith.constant 0 : index
      %82 = vector.load %arg7[%c0_41, %c0_42, %c0_43] : memref<1x1x128xf32, #tpu.memory_space<vmem>>, vector<1x1x128xf32>
      %83 = math.log %81 : vector<16x256xf32>
      %cst_44 = arith.constant 0.000000e+00 : f32
      %84 = vector.broadcast %cst_44 : f32 to vector<16x256xf32>
      %85 = arith.subf %84, %83 : vector<16x256xf32>
      %cst_45 = arith.constant 0.000000e+00 : f32
      %86 = vector.broadcast %cst_45 : f32 to vector<16x256xf32>
      %87 = arith.select %73, %85, %86 : vector<16x256xi1>, vector<16x256xf32>
      %88 = vector.shape_cast %87 : vector<16x256xf32> to vector<1x16x256xf32>
      %cst_46 = arith.constant dense<0.000000e+00> : vector<1xf32>
      %89 = vector.multi_reduction <add>, %88, %cst_46 [1, 2] : vector<1x16x256xf32> to vector<1xf32>
      %90 = vector.shape_cast %89 : vector<1xf32> to vector<1x1x1xf32>
      %91 = vector.extract %90[0, 0, 0] : f32 from vector<1x1x1xf32>
      %92 = vector.broadcast %91 : f32 to vector<1x1xf32>
      %93 = vector.shape_cast %92 : vector<1x1xf32> to vector<1x1x1xf32>
      %94 = vector.broadcast %93 : vector<1x1x1xf32> to vector<1x1x128xf32>
      %95 = arith.addf %82, %94 : vector<1x1x128xf32>
      %c0_47 = arith.constant 0 : index
      %c0_48 = arith.constant 0 : index
      %c0_49 = arith.constant 0 : index
      %96 = vector.load %arg7[%c0_47, %c0_48, %c0_49] : memref<1x1x128xf32, #tpu.memory_space<vmem>>, vector<1x1x128xf32>
      tpu.vector_store %arg7[%c0_47, %c0_48, %c0_49], %95 {strides = array<i32>} : memref<1x1x128xf32, #tpu.memory_space<vmem>>, vector<1x1x128xf32>,
    } else {
    }
    return
  }
  func.func @transform_0(%arg0: i32, %arg1: i32, %arg2: i32) -> (i32, i32, i32) {
    %c0_i32 = arith.constant 0 : i32
    %c0_i32_0 = arith.constant 0 : i32
    return %arg0, %c0_i32, %arg2 : i32, i32, i32
  }
  func.func @transform_1(%arg0: i32, %arg1: i32, %arg2: i32) -> (i32, i32, i32, i32) {
    %c0_i32 = arith.constant 0 : i32
    %c0_i32_0 = arith.constant 0 : i32
    %c0_i32_1 = arith.constant 0 : i32
    %c0_i32_2 = arith.constant 0 : i32
    return %arg0, %c0_i32, %c0_i32_0, %c0_i32_1 : i32, i32, i32, i32
  }
  func.func @transform_2(%arg0: i32, %arg1: i32, %arg2: i32) -> (i32, i32, i32) {
    %c0_i32 = arith.constant 0 : i32
    %c0_i32_0 = arith.constant 0 : i32
    %c0_i32_1 = arith.constant 0 : i32
    return %arg0, %c0_i32, %c0_i32_0 : i32, i32, i32
  }
  func.func @transform_3(%arg0: i32, %arg1: i32, %arg2: i32) -> (i32, i32, i32) {
    %c0_i32 = arith.constant 0 : i32
    %c0_i32_0 = arith.constant 0 : i32
    %c0_i32_1 = arith.constant 0 : i32
    return %arg0, %c0_i32, %c0_i32_0 : i32, i32, i32
  }
  func.func @transform_4(%arg0: i32, %arg1: i32, %arg2: i32) -> (i32, i32, i32) {
    %c0_i32 = arith.constant 0 : i32
    %c0_i32_0 = arith.constant 0 : i32
    %c0_i32_1 = arith.constant 0 : i32
    return %arg0, %c0_i32, %c0_i32_0 : i32, i32, i32
  }
}

</mosaic_0001>

<bundles_post_ra>
// kernel: tpu_custom_call.1
= control target key start
LH: loop header
LB: loop body
LE: loop exit
PB: predicated region body
PF: predicated region fallthrough
CT: control target
= control target key end

     0   :  { %s1679_s0 = inlined_call_operand.vmem [shape: f32[2,16,512], index: 0, kind: input, shape index: {}]   ;;  %s1680_s1 = inlined_call_operand.vmem [shape: s32[2,4,16,1], index: 1, kind: input, shape index: {}]   ;;  %s1681_s2 = inlined_call_operand.hbm [shape: f32[2,1,128], index: 2, kind: output, shape index: {0}]   ;;  %s1682_s3 = inlined_call_operand.hbm [shape: f32[2,1,128], index: 3, kind: output, shape index: {1}]   ;;  %s1683_s4 = inlined_call_operand.hbm [shape: f32[2,1,128], index: 4, kind: output, shape index: {2}]  }
   0x1   :  { %1692 = sst [smem:[#allocation17_spill]] %s1679_s0 }
   0x2   :  { %1693 = sst [smem:[#allocation18_spill]] %s1680_s1 }
   0x3   :  { %1694 = sst [smem:[#allocation19_spill]] %s1682_s3 }
   0x4   :  { %10 = vsyncpa [#allocation6], 0 }
   0x5   :  { %12 = vsyncpa [#allocation6 + $0x1], 0 }
   0x6   :  { %13 = vsyncpa [#allocation8], 0 }
   0x7   :  { %15 = vsyncpa [#allocation8 + $0x1], 0  ;;  %s1231_s15 = smov 0   ;;  %s1233_s16 = smov 0  }
   0x8   :  { %s1235_s17 = smov 0   ;;  %s1237_s18 = smov 0  }
   0x9   :  { %s1239_s19 = smov 0   ;;  %s1241_s20 = smov 0  }
   0xa   :  { %s1243_s21 = smov 0   ;;  %s1245_s22 = smov 0  }
   0xb   :  { %s1247_s23 = smov 0   ;;  %s1249_s24 = smov 0  }
   0xc   :  { %s1251_s25 = smov 0   ;;  %s1253_s26 = smov 0  }
   0xd LB: > { %1695 = sst [smem:[#allocation12_spill]] %s1187_s24  ;;  %s33_s27 = sadd.s32 1, %s1183_s23  ;;  %s1195_s26 = sphi %s1253_s26, %s21_s26   ;;  %s1191_s25 = sphi %s1251_s25, %s1729_s25   ;;  %s1187_s24 = sphi %s1249_s24, %s1728_s24   ;;  %s1183_s23 = sphi %s1247_s23, %s1736_s23   ;;  %s1179_s22 = sphi %s1245_s22, %s1726_s22   ;;  %s1175_s21 = sphi %s1243_s21, %s1725_s21   ;;  %s1171_s20 = sphi %s1241_s20, %s1735_s20   ;;  %s1167_s19 = sphi %s1239_s19, %s1734_s19   ;;  %s1163_s18 = sphi %s1237_s18, %s1733_s18   ;;  %s1159_s17 = sphi %s1235_s17, %s1732_s17   ;;  %s1155_s16 = sphi %s1233_s16, %s1731_s16   ;;  %s1151_s15 = sphi %s1231_s15, %s1730_s15  }
   0xe   : > { %1696 = sst [smem:[#allocation13_spill]] %s1191_s25  ;;  %p34_p0 = scmp.ge.s32.totalorder %s33_s27, 2 }
   0xf   : > { %s36_s28 = sadd.s32 1, %s1187_s24  ;;  %s1685_s29 = sadd.s32 4294967295, %s1195_s26  }
  0x10   : > { %p56_p1 = scmp.ne.s32.totalorder %s1167_s19, %s1163_s18  ;;  %s1738_s27 = smov (%p34_p0, %s33_s27), 0 }
  0x11   : > { %1697 = sst [smem:[#allocation14_spill]] %s1738_s27  ;;  %s1740_s28 = smov (!%p34_p0, %s36_s28), %s1187_s24 }
  0x12   : > { %s1684_s30 = sadd.s32 4294967294, %s1195_s26   ;;  %p57_p2 = scmp.eq.s32.totalorder %s1195_s26, 0 }
  0x13   : > { %p38_p3 = scmp.ge.s32.totalorder %s1740_s28, 2  ;;  %s40_s5 = sadd.s32 1, %s1191_s25 }
  0x14   : > { %p1302_p4 = por %p57_p2, %p56_p1  ;;  %p111_p5 = scmp.ne.s32.totalorder %s1159_s17, %s1155_s16 }
  0x15   : > { %s1742_s28 = smov (%p38_p3, %s1740_s28), 0  ;;  %s1744_s5 = smov (!%p38_p3, %s40_s5), %s1191_s25 }
  0x16   : > { %1699 = sst [smem:[#allocation15_spill]] %s1742_s28  ;;  %p112_p6 = scmp.eq.s32.totalorder %s1685_s29, 7 }
  0x17   : > { %p117_p7 = scmp.ne.s32.totalorder %s1155_s16, %s1151_s15  ;;  %p42_p8 = scmp.ge.s32.totalorder %s1744_s5, 2 }
  0x18   : > { %p118_p9 = scmp.eq.s32.totalorder %s1684_s30, 7  ;;  %s45_s7 = ssub.s32 %s1183_s23, %s1738_s27 }
  0x19   : > { %p1319_p10 = por %p112_p6, %p111_p5  ;;  %s1746_s5 = smov (%p42_p8, %s1744_s5), 0 }
  0x1a   : > { %1701 = sst [smem:[#allocation16_spill]] %s1746_s5  ;;  %s49_s9 = sadd.s32 1, %s1167_s19 }
  0x1b   : > { %p1326_p11 = por %p118_p9, %p117_p7  ;;  %s44_s11 = ssub.s32 %s1191_s25, %s1746_s5 }
  0x1c   : > { %s101_s12 = sadd.s32 1, %s1159_s17  ;;  %s46_s13 = sor.u32 %s45_s7, %s44_s11 }
  0x1d   : > { %p99_p12 = scmp.eq.s32.totalorder %s44_s11, 0  ;;  %p47_p13 = scmp.eq.s32.totalorder %s46_s13, 0 }
  0x1e   : > { %p815_p0 = scmp.ge.s32.totalorder %s1195_s26, 8 }
  0x1f   : > { %s1334_s14 = scalar_select %p99_p12, %s1159_s17, %s101_s12  }
  0x20   : > { %s1337_s30 = scalar_select %p47_p13, %s1167_s19, %s49_s9  }
  0x21   : > { %186 = sbr.rel (%p815_p0) target bundleno = 50 (0x32), region = 16 }
  0x26   : > { %189 = sbr.rel (!%p1302_p4) target bundleno = 50 (0x32), region = 20  ;;  %s191_s29 = sand.u32 (%p1302_p4), 1, %s1167_s19  }
  0x27   : > { %s817_s28 = sshll.u32 (%p1302_p4), %s1183_s23, 1  ;;  %s816_s5 = sshll.u32 (%p1302_p4), %s191_s29, 5 }
  0x28   : > { %s818_s27 = sshll.u32 (%p1302_p4), %s1191_s25, 3  ;;  %s1703_s0 = sld [smem:[#allocation17_spill]] (%p1302_p4) }
  0x29   : > { %s196_s7 = sadd.s32 (%p1302_p4), %s818_s27, %s817_s28  ;;  %s193_s24 = scalar_lea.vmem (%p1302_p4), [#allocation4], %s816_s5 }
  0x2a   : > { %s819_s11 = sshll.u32 (%p1302_p4), %s196_s7, 3 }
  0x2e   : > { %s198_s9 = scalar_lea.vmem %s1703_s0, %s819_s11 }
  0x2f   : > { %v211_v0 = vld [vmem:[%s198_s9] sm:$0xff]  ;;  %v213_v1 = vld [vmem:[%s198_s9 + $0x8] sm:$0xff] }
  0x30   : > { %v215_v2 = vld [vmem:[%s198_s9 + $0x20] sm:$0xff]  ;;  %212 = vst [vmem:[%s193_s24] sm:$0xff] %v211_v0  ;;  %214 = vst [vmem:[%s193_s24 + $0x8] sm:$0xff] %v213_v1  ;;  %v217_v3 = vld [vmem:[%s198_s9 + $0x28] sm:$0xff] }
  0x31   : > { %216 = vst [vmem:[%s193_s24 + $0x10] sm:$0xff] %v215_v2  ;;  %218 = vst [vmem:[%s193_s24 + $0x18] sm:$0xff] %v217_v3 }
  0x32 PF: > { %p820_p1 = scmp.ge.s32.totalorder %s1195_s26, 1  ;;  %p231_p2 = scmp.lt.s32.totalorder %s1195_s26, 9 }
  0x34   : > { %p232_p3 = pnand %p820_p1, %p231_p2 }
  0x35   : > { %s238_s27 = sand.u32 (!%p232_p3), 1, %s1163_s18   ;;  %s1352_s28 = sand.u32 (!%p232_p3), 1, %s1155_s16  }
  0x36   : > { %235 = sbr.rel (%p232_p3) target bundleno = 1683 (0x693), region = 47  ;;  %s821_s24 = sshll.u32 (!%p232_p3), %s238_s27, 5 }
  0x37   : > { %p276_p4 = scmp.lt.s32.totalorder (!%p232_p3), %s1179_s22, 1  ;;  %p281_p5 = scmp.eq.s32.totalorder (!%p232_p3), %s1175_s21, 0 }
  0x38   : > { %p282_p6 = scmp.eq.s32.totalorder (!%p232_p3), %s1171_s20, 0  ;;  %s1704_s1 = sld [smem:[#allocation18_spill]] (!%p232_p3) }
  0x39   : > { %s240_s13 = scalar_lea.vmem (!%p232_p3), [#allocation4], %s821_s24  ;;  %s1364_s12 = scalar_lea.vmem (!%p232_p3), [#allocation5], %s1352_s28 }
  0x3a   : > { %p283_p7 = pnand (!%p232_p3), %p282_p6, %p281_p5  ;;  %s1367_s18 = scalar_lea.vmem (!%p232_p3), [#allocation7], %s1352_s28 }
  0x3b   : > { %s277_s29 = scalar_select %p276_p4, %s1179_s22, 1 }
  0x3c   : > { %s1370_s9 = scalar_lea.vmem [#allocation9], %s1352_s28  ;;  %286 = sbr.rel (%p283_p7) target bundleno = 70 (0x46), region = 55 }
  0x3d   : > { %s845_s5 = sshll.u32 %s277_s29, 6 }
  0x3e   : > { %s1361_s11 = scalar_lea.vmem %s1704_s1, %s845_s5 }
  0x41   : > { %vm290_vm0 = vcmask 7168   ;;  %v1197_v4 = vmov 0.0   ;;  %v1198_v5 = vmov -inf  }
  0x42   : > { %287 = vst [vmem:[%s1364_s12] sm:$0x1] %v1197_v4  ;;  %288 = vst [vmem:[%s1367_s18] sm:$0x1] %v1197_v4 }
  0x43   : > { %289 = vst [vmem:[%s1370_s9] sm:$0x1] %v1197_v4  ;;  %291 = vst.msk [vmem:[#allocation2] sm:$0xff] %vm290_vm0, %v1198_v5 }
  0x44   : > { %292 = vst.msk [vmem:[#allocation2 + $0x8] sm:$0xff] %vm290_vm0, %v1198_v5  ;;  %293 = vst.msk [vmem:[#allocation3] sm:$0xff] %vm290_vm0, %v1197_v4 }
  0x45   : > { %294 = vst.msk [vmem:[#allocation3 + $0x8] sm:$0xff] %vm290_vm0, %v1197_v4 }
  0x46 PF: > { %v1375_v6 = vld [vmem:[%s240_s13] sm:$0xff]  ;;  %v1377_v7 = vld [vmem:[%s240_s13 + $0x8] sm:$0xff]  ;;  %v1379_v8 = vld [vmem:[%s240_s13 + $0x10] sm:$0xff]  ;;  %p824_p8 = scmp.ne.s32.totalorder %s1175_s21, 0 }
  0x47   : > { %v1381_v9 = vld [vmem:[%s240_s13 + $0x18] sm:$0xff] }
  0x48   : > { %301 = sbr.rel (%p824_p8) target bundleno = 509 (0x1fd), region = 59 }
  0x4d   : > { %v304_v10 = vmax.f32 %v1375_v6, %v1377_v7  ;;  %v307_v11 = vmax.f32 %v1379_v8, %v1381_v9  ;;  %v1199_v12 = vmov 0   ;;  %v302_v13 = vld [vmem:[#allocation2] sm:$0xff]  ;;  %vm352_vm1 = vcmask 7168   ;;  %v303_v16 = vld [vmem:[#allocation2 + $0x8] sm:$0xff]  ;;  %v312_v40 = vld [vmem:[#allocation3] sm:$0xff] }
  0x4e   : > { %973 = vset.pattern.permute.xlu1 %v1199_v12  ;;  %974 = vset.pattern.permute.xlu0 %v1199_v12  ;;  %v313_v44 = vld [vmem:[#allocation3 + $0x8] sm:$0xff] }
  0x4f   : > { %305 = vmax.xlane.f32.xlu0 %v304_v10 }
  0x53   : > { %308 = vmax.xlane.f32.xlu0 %v307_v11 }
  0xd8   : > { %v306_v14 = vpop.xlane.xlu0 %305 }
  0xd9   : > { %v310_v15 = vmax.f32 %v302_v13, %v306_v14 }
  0xdb   : > { %v314_v17 = vsub.f32 %v302_v13, %v310_v15  ;;  %355 = vst.msk [vmem:[#allocation2] sm:$0xff] %vm352_vm1, %v310_v15  ;;  %324 = vperm.xlu1 %973, %v310_v15  }
  0xdc   : > { %v309_v18 = vpop.xlane.xlu0 %308 }
  0xdd   : > { %v311_v19 = vmax.f32 %v303_v16, %v309_v18  ;;  %v316_v37 = vmul.f32 1.442695, %v314_v17 }
  0xdf   : > { %v315_v20 = vsub.f32 %v303_v16, %v311_v19  ;;  %356 = vst.msk [vmem:[#allocation2 + $0x8] sm:$0xff] %vm352_vm1, %v311_v19  ;;  %329 = vperm.xlu1 %973, %v311_v19  }
  0xe1   : > { %v318_v38 = vmul.f32 1.442695, %v315_v20 }
 0x156   : > { %v325_v21 = vpop.permute.xlu1 %324 }
 0x157   : > { %v332_v22 = vsub.f32 %v1375_v6, %v325_v21  ;;  %v333_v23 = vsub.f32 %v1377_v7, %v325_v21 }
 0x159   : > { %v336_v24 = vmul.f32 1.442695, %v332_v22  ;;  %v338_v25 = vmul.f32 1.442695, %v333_v23 }
 0x15a   : > { %v330_v26 = vpop.permute.xlu1 %329 }
 0x15b   : > { %975 = vpow2.f32 %v336_v24  ;;  %v334_v27 = vsub.f32 %v1379_v8, %v330_v26  ;;  %v335_v28 = vsub.f32 %v1381_v9, %v330_v26 }
 0x15c   : > { %977 = vpow2.f32 %v338_v25 }
 0x15d   : > { %v340_v29 = vmul.f32 1.442695, %v334_v27  ;;  %v342_v30 = vmul.f32 1.442695, %v335_v28 }
 0x15f   : > { %979 = vpow2.f32 %v340_v29 }
 0x160   : > { %981 = vpow2.f32 %v342_v30 }
 0x161   : > { %983 = vpow2.f32 %v316_v37 }
 0x162   : > { %985 = vpow2.f32 %v318_v38 }
 0x168   : > { %v976_v31 = vpop.eup %975 }
 0x169   : > { %v978_v32 = vpop.eup %977 }
 0x16a   : > { %v344_v33 = vadd.f32 %v978_v32, %v976_v31 }
 0x16c   : > { %v980_v34 = vpop.eup %979  ;;  %345 = vadd.xlane.f32.xlu0 %v344_v33 }
 0x16d   : > { %v982_v35 = vpop.eup %981 }
 0x16e   : > { %v347_v36 = vadd.f32 %v982_v35, %v980_v34  ;;  %v984_v39 = vpop.eup %983 }
 0x16f   : > { %v320_v41 = vmul.f32 %v984_v39, %v312_v40  ;;  %v986_v42 = vpop.eup %985 }
 0x170   : > { %348 = vadd.xlane.f32.xlu1 %v347_v36  ;;  %v321_v46 = vmul.f32 %v986_v42, %v313_v44 }
 0x1f5   : > { %v346_v43 = vpop.xlane.xlu0 %345 }
 0x1f6   : > { %v350_v45 = vadd.f32 %v346_v43, %v320_v41 }
 0x1f8   : > { %353 = vst.msk [vmem:[#allocation3] sm:$0xff] %vm352_vm1, %v350_v45 }
 0x1f9   : > { %v349_v47 = vpop.xlane.xlu1 %348 }
 0x1fa   : > { %v351_v48 = vadd.f32 %v349_v47, %v321_v46 }
 0x1fc   : > { %354 = vst.msk [vmem:[#allocation3 + $0x8] sm:$0xff] %vm352_vm1, %v351_v48 }
 0x1fd PF: > { %p825_p9 = scmp.ne.s32.totalorder %s1175_s21, 1 }
 0x1fe   : > { %s826_s21 = sshll.u32 (!%p825_p9), %s1171_s20, 8  ;;  %p833_p12 = scmp.ne.s32.totalorder (!%p825_p9), %s1171_s20, 0 }
 0x1ff   : > { %360 = sbr.rel (%p825_p9) target bundleno = 1613 (0x64d), region = 63 }
 0x204   : > { %v363_v49 = vld [vmem:[#allocation2] sm:$0xff]  ;;  %v1200_v51 = vmov 0   ;;  %v364_v52 = vld [vmem:[#allocation2 + $0x8] sm:$0xff]  ;;  %v382_v54 = vlaneseq  ;;  %v385_v57 = vstv %s826_s21  ;;  %v1201_v0 = vmov 0.0   ;;  %v365_v34 = vld [vmem:[#allocation3] sm:$0xff] }
 0x205   : > { %v361_v50 = vld [vmem:[%s1361_s11] sm:$0xff]  ;;  %988 = vset.pattern.permute.xlu1 %v1200_v51  ;;  %987 = vset.pattern.permute.xlu0 %v1200_v51  ;;  %v362_v53 = vld [vmem:[%s1361_s11 + $0x8] sm:$0xff]  ;;  %vm437_vm8 = vcmask 7168   ;;  %v1452_v35 = vld [vmem:[#allocation3 + $0x8] sm:$0xff] }
 0x206   : > { %369 = vperm.xlu0 %987, %v363_v49   ;;  %389 = vperm.xlu1 %988, %v361_v50   ;;  %v383_v55 = vand.u32 127, %v382_v54  ;;  %vm406_vm6 = vcmp.ne.s32.totalorder %v361_v50, 0  ;;  %vm407_vm7 = vcmp.ne.s32.totalorder %v362_v53, 0  ;;  %v434_v43 = vld [vmem:[%s1364_s12] sm:$0x1] }
 0x207   : > { %v831_v23 = vsel %vm406_vm6, 1.0, %v1201_v0  ;;  %v832_v27 = vsel %vm407_vm7, 1.0, %v1201_v0 }
 0x208   : > { %v384_v56 = vadd.s32 128, %v383_v55  ;;  %v1402_v58 = vadd.s32 %v385_v57, %v383_v55 }
 0x20a   : > { %374 = vperm.xlu0 %987, %v364_v52   ;;  %392 = vperm.xlu1 %988, %v362_v53   ;;  %v1404_v59 = vadd.s32 %v385_v57, %v384_v56 }
 0x281   : > { %v370_v60 = vpop.permute.xlu0 %369  ;;  %v1406_v61 = vpop.permute.xlu1 %389 }
 0x282   : > { %v1409_v62 = vsub.f32 %v1375_v6, %v370_v60  ;;  %v1412_v63 = vsub.f32 %v1377_v7, %v370_v60  ;;  %vm394_vm2 = vcmp.eq.s32.totalorder %v1402_v58, %v1406_v61  ;;  %vm395_vm3 = vcmp.eq.s32.totalorder %v1404_v59, %v1406_v61 }
 0x283   : > { %v827_v1 = vsel %vm394_vm2, 1.0, %v1201_v0  ;;  %v828_v2 = vsel %vm395_vm3, 1.0, %v1201_v0 }
 0x284   : > { %v412_v3 = vmul.f32 %v827_v1, %v1409_v62  ;;  %v413_v4 = vmul.f32 %v828_v2, %v1412_v63  ;;  %v422_v15 = vadd.f32 %v1412_v63, %v1409_v62 }
 0x285   : > { %v375_v5 = vpop.permute.xlu0 %374  ;;  %v1426_v6 = vpop.permute.xlu1 %392 }
 0x286   : > { %v1429_v7 = vsub.f32 %v1379_v8, %v375_v5  ;;  %v1432_v10 = vsub.f32 %v1381_v9, %v375_v5  ;;  %vm396_vm4 = vcmp.eq.s32.totalorder %v1402_v58, %v1426_v6  ;;  %vm397_vm5 = vcmp.eq.s32.totalorder %v1404_v59, %v1426_v6 }
 0x287   : > { %v829_v11 = vsel %vm396_vm4, 1.0, %v1201_v0  ;;  %v830_v12 = vsel %vm397_vm5, 1.0, %v1201_v0  ;;  %v416_v13 = vadd.f32 %v413_v4, %v412_v3 }
 0x288   : > { %v414_v8 = vmul.f32 %v829_v11, %v1429_v7  ;;  %v415_v9 = vmul.f32 %v830_v12, %v1432_v10  ;;  %v425_v16 = vadd.f32 %v1432_v10, %v1429_v7 }
 0x289   : > { %417 = vadd.xlane.f32.xlu0 %v416_v13 }
 0x28a   : > { %v419_v14 = vadd.f32 %v415_v9, %v414_v8 }
 0x28c   : > { %420 = vadd.xlane.f32.xlu1 %v419_v14 }
 0x28d   : > { %423 = vadd.xlane.f32.xlu0 %v422_v15 }
 0x291   : > { %426 = vadd.xlane.f32.xlu0 %v425_v16 }
 0x312   : > { %v418_v17 = vpop.xlane.xlu0 %417 }
 0x313   : > { %v428_v19 = vmul.f32 -0.9, %v418_v17 }
 0x315   : > { %v421_v21 = vpop.xlane.xlu1 %420 }
 0x316   : > { %v424_v18 = vpop.xlane.xlu0 %423  ;;  %v429_v25 = vmul.f32 -0.9, %v421_v21 }
 0x317   : > { %v430_v20 = vmul.f32 0.0001953125, %v424_v18 }
 0x319   : > { %v432_v22 = vsub.f32 %v428_v19, %v430_v20 }
 0x31a   : > { %v427_v24 = vpop.xlane.xlu0 %426 }
 0x31b   : > { %v431_v26 = vmul.f32 0.0001953125, %v427_v24  ;;  %v435_v29 = vmul.f32 %v831_v23, %v432_v22 }
 0x31d   : > { %v433_v28 = vsub.f32 %v429_v25, %v431_v26  ;;  %v438_v31 = vsel %vm437_vm8, %v435_v29, 0.0 }
 0x31f   : > { %v436_v30 = vmul.f32 %v832_v27, %v433_v28 }
 0x321   : > { %v439_v32 = vsel %vm437_vm8, %v436_v30, 0.0 }
 0x322   : > { %v440_v33 = vadd.f32 %v439_v32, %v438_v31 }
 0x324   : > { %441 = vadd.xlane.f32.xlu1 %v440_v33 }
 0x3ad   : > { %v442_v36 = vpop.xlane.xlu1 %441 }
 0x3ae   : > { %v443_v37 = vrot.slane %v442_v36, 4 }
 0x3b0   : > { %v444_v38 = vadd.f32 %v443_v37, %v442_v36 }
 0x3b2   : > { %v445_v39 = vrot.slane %v444_v38, 2 }
 0x3b4   : > { %v446_v40 = vadd.f32 %v445_v39, %v444_v38 }
 0x3b6   : > { %v447_v41 = vrot.slane %v446_v40, 1 }
 0x3b8   : > { %v448_v42 = vadd.f32 %v447_v41, %v446_v40 }
 0x3ba   : > { %846 = vpush %v448_v42 }
 0x3eb   : > { %s847_s27 = spop %846  ;;  %455 = sbr.rel (%p833_p12) target bundleno = 1238 (0x4d6), region = 67 }
 0x3ec   : > { %v450_v44 = vstv %s847_s27 }
 0x3ed   : > { %v451_v45 = vadd.f32 %v450_v44, %v434_v43 }
 0x3ef   : > { %452 = vst [vmem:[%s1364_s12] sm:$0x1] %v451_v45 }
 0x3f0   : > { %989 = vlog2.f32 %v365_v34  ;;  %v479_v55 = vsel %vm437_vm8, %v831_v23, 0.0  ;;  %v480_v56 = vsel %vm437_vm8, %v832_v27, 0.0  ;;  %v478_v20 = vld [vmem:[%s1367_s18] sm:$0x1] }
 0x3f1   : > { %991 = vlog2.f32 %v1452_v35  ;;  %v481_v60 = vadd.f32 %v480_v56, %v479_v55 }
 0x3f6   : > { %v456_v17 = vld [vmem:[%s1364_s12] sm:$0x1] }
 0x3fd   : > { %v990_v46 = vpop.eup %989 }
 0x3fe   : > { %v992_v47 = vpop.eup %991  ;;  %v458_v48 = vmul.f32 0.6931472, %v990_v46 }
 0x3ff   : > { %v460_v49 = vmul.f32 0.6931472, %v992_v47 }
 0x400   : > { %v461_v50 = vmul.f32 %v831_v23, %v458_v48 }
 0x401   : > { %v462_v52 = vmul.f32 %v832_v27, %v460_v49 }
 0x402   : > { %v463_v53 = vsel %vm437_vm8, %v461_v50, 0.0 }
 0x403   : > { %v464_v54 = vsel %vm437_vm8, %v462_v52, 0.0 }
 0x404   : > { %v465_v57 = vadd.f32 %v464_v54, %v463_v53 }
 0x406   : > { %466 = vadd.xlane.f32.xlu0 %v465_v57 }
 0x40a   : > { %482 = vadd.xlane.f32.xlu0 %v481_v60 }
 0x48f   : > { %v467_v0 = vpop.xlane.xlu0 %466 }
 0x490   : > { %v468_v1 = vrot.slane %v467_v0, 4 }
 0x492   : > { %v469_v2 = vadd.f32 %v468_v1, %v467_v0 }
 0x493   : > { %v483_v3 = vpop.xlane.xlu0 %482 }
 0x494   : > { %v470_v4 = vrot.slane %v469_v2, 2  ;;  %v484_v5 = vrot.slane %v483_v3, 4 }
 0x496   : > { %v485_v11 = vadd.f32 %v484_v5, %v483_v3  ;;  %v471_v12 = vadd.f32 %v470_v4, %v469_v2 }
 0x498   : > { %v486_v13 = vrot.slane %v485_v11, 2  ;;  %v472_v8 = vrot.slane %v471_v12, 1 }
 0x49a   : > { %v487_v9 = vadd.f32 %v486_v13, %v485_v11  ;;  %v473_v14 = vadd.f32 %v472_v8, %v471_v12 }
 0x49c   : > { %848 = vpush %v473_v14  ;;  %v488_v15 = vrot.slane %v487_v9, 1 }
 0x49e   : > { %v489_v16 = vadd.f32 %v488_v15, %v487_v9 }
 0x4a0   : > { %850 = vpush %v489_v16 }
 0x4cd   : > { %s849_s20 = spop %848 }
 0x4ce   : > { %v475_v18 = vstv %s849_s20 }
 0x4cf   : > { %v476_v19 = vadd.f32 %v475_v18, %v456_v17 }
 0x4d1   : > { %477 = vst [vmem:[%s1364_s12] sm:$0x1] %v476_v19  ;;  %s851_s24 = spop %850 }
 0x4d2   : > { %v491_v21 = vstv %s851_s24 }
 0x4d3   : > { %v492_v22 = vadd.f32 %v491_v21, %v478_v20 }
 0x4d5   : > { %493 = vst [vmem:[%s1367_s18] sm:$0x1] %v492_v22 }
 0x4d6 PF: > { %993 = vset.pattern.permute.xlu0 %v1200_v51  ;;  %994 = vset.pattern.permute.xlu1 %v1200_v51  ;;  %995 = vrcp.f32 %v365_v34  ;;  %v834_v23 = vld [vmem:[%s1361_s11 + $0x10] sm:$0xff]  ;;  %v836_v24 = vld [vmem:[%s1361_s11 + $0x20] sm:$0xff]  ;;  %v835_v25 = vld [vmem:[%s1361_s11 + $0x18] sm:$0xff]  ;;  %v557_v51 = vmul.f32 1.442695, %v1409_v62  ;;  %vm1690_vm9 = vcmp.ne.s32.totalorder %v1402_v58, 0 }
 0x4d7   : > { %498 = vperm.xlu1 %994, %v834_v23   ;;  %997 = vrcp.f32 %v1452_v35  ;;  %v839_v26 = vld [vmem:[%s1361_s11 + $0x38] sm:$0xff]  ;;  %v838_v29 = vld [vmem:[%s1361_s11 + $0x30] sm:$0xff]  ;;  %v837_v30 = vld [vmem:[%s1361_s11 + $0x28] sm:$0xff]  ;;  %v559_v31 = vmul.f32 1.442695, %v1412_v63  ;;  %vm1202_vm10 = vmmov 1  }
 0x4d8   : > { %999 = vpow2.f32 %v557_v51  ;;  %v561_v32 = vmul.f32 1.442695, %v1429_v7  ;;  %v563_v33 = vmul.f32 1.442695, %v1432_v10  ;;  %vm543_vm11 = vmxor %vm394_vm2, %vm1202_vm10  ;;  %vm1689_vm12 = vcmp.ne.s32.totalorder %v1404_v59, 0 }
 0x4d9   : > { %1001 = vpow2.f32 %v559_v31  ;;  %vm544_vm13 = vmxor %vm395_vm3, %vm1202_vm10  ;;  %v1707_v53 = vmov 0 }
 0x4da   : > { %1003 = vpow2.f32 %v561_v32  ;;  %vm1493_vm0 = vmand %vm1690_vm9, %vm543_vm11 }
 0x4db   : > { %511 = vperm.xlu1 %994, %v836_v24   ;;  %1005 = vpow2.f32 %v563_v33  ;;  %vm1499_vm1 = vmand %vm1689_vm12, %vm544_vm13 }
 0x4dc   : > { %v1708_v53 = vsel %vm1499_vm1, 4294967295, %v1707_v53  ;;  %vm545_vm6 = vmxor %vm396_vm4, %vm1202_vm10 }
 0x4dd   : > { %vm1514_vm11 = vmxor %vm397_vm5, %vm1202_vm10 }
 0x4df   : > { %501 = vperm.xlu1 %994, %v835_v25  }
 0x4e3   : > { %v996_v27 = vpop.eup %995  ;;  %531 = vperm.xlu1 %994, %v839_v26  }
 0x4e4   : > { %567 = vperm.xlu0 %993, %v996_v27   ;;  %v998_v28 = vpop.eup %997  ;;  %v587_v27 = vld [vmem:[%s1370_s9] sm:$0x1] }
 0x4e5   : > { %v1000_v34 = vpop.eup %999 }
 0x4e6   : > { %v1002_v35 = vpop.eup %1001 }
 0x4e7   : > { %v1004_v37 = vpop.eup %1003 }
 0x4e8   : > { %572 = vperm.xlu0 %993, %v998_v28   ;;  %v1006_v41 = vpop.eup %1005 }
 0x4ec   : > { %528 = vperm.xlu0 %993, %v838_v29  }
 0x4f0   : > { %514 = vperm.xlu0 %993, %v837_v30  }
 0x552   : > { %v499_v40 = vpop.permute.xlu1 %498 }
 0x553   : > { %vm503_vm14 = vcmp.eq.s32.totalorder %v1402_v58, %v499_v40  ;;  %vm504_vm2 = vcmp.eq.s32.totalorder %v1404_v59, %v499_v40 }
 0x556   : > { %v512_v47 = vpop.permute.xlu1 %511 }
 0x557   : > { %vm516_vm15 = vcmp.eq.s32.totalorder %v1402_v58, %v512_v47  ;;  %vm517_vm3 = vcmp.eq.s32.totalorder %v1404_v59, %v512_v47 }
 0x558   : > { %vm520_vm7 = vmor %vm503_vm14, %vm516_vm15  ;;  %vm1713_vm15 = vcmp.ne.s32.totalorder %v1402_v58, 0 }
 0x559   : > { %vm521_vm13 = vmor %vm504_vm2, %vm517_vm3 }
 0x55a   : > { %v502_v61 = vpop.permute.xlu1 %501  ;;  %vm1527_vm1 = vmand %vm1713_vm15, %vm545_vm6 }
 0x55b   : > { %vm505_vm4 = vcmp.eq.s32.totalorder %v1402_v58, %v502_v61  ;;  %vm506_vm2 = vcmp.eq.s32.totalorder %v1404_v59, %v502_v61 }
 0x55e   : > { %v532_v6 = vpop.permute.xlu1 %531 }
 0x55f   : > { %v568_v36 = vpop.permute.xlu0 %567  ;;  %vm536_vm15 = vcmp.eq.s32.totalorder %v1404_v59, %v532_v6 }
 0x560   : > { %v575_v38 = vmul.f32 %v1000_v34, %v568_v36  ;;  %v576_v39 = vmul.f32 %v1002_v35, %v568_v36 }
 0x562   : > { %v579_v42 = vsub.f32 1.0, %v575_v38  ;;  %v580_v62 = vsub.f32 1.0, %v576_v39 }
 0x563   : > { %v573_v43 = vpop.permute.xlu0 %572 }
 0x564   : > { %v583_v63 = vmax.f32 %v579_v42, 1e-05  ;;  %v584_v44 = vmax.f32 %v580_v62, 1e-05  ;;  %v577_v45 = vmul.f32 %v1004_v37, %v573_v43  ;;  %v578_v7 = vmul.f32 %v1006_v41, %v573_v43 }
 0x566   : > { %1007 = vlog2.f32 %v583_v63  ;;  %v581_v46 = vsub.f32 1.0, %v577_v45  ;;  %v582_v10 = vsub.f32 1.0, %v578_v7 }
 0x567   : > { %1009 = vlog2.f32 %v584_v44  ;;  %v529_v50 = vpop.permute.xlu0 %528 }
 0x568   : > { %v585_v48 = vmax.f32 %v581_v46, 1e-05  ;;  %v586_v49 = vmax.f32 %v582_v10, 1e-05  ;;  %vm533_vm8 = vcmp.eq.s32.totalorder %v1402_v58, %v529_v50  ;;  %vm534_vm12 = vcmp.eq.s32.totalorder %v1404_v59, %v529_v50 }
 0x569   : > { %vm1519_vm9 = vmor %vm520_vm7, %vm533_vm8  ;;  %vm535_vm7 = vcmp.eq.s32.totalorder %v1402_v58, %v532_v6 }
 0x56a   : > { %1011 = vlog2.f32 %v585_v48  ;;  %vm1531_vm5 = vmor %vm521_vm13, %vm534_vm12  ;;  %vm1718_vm12 = vnez %v1708_v53 }
 0x56b   : > { %1013 = vlog2.f32 %v586_v49  ;;  %v515_v54 = vpop.permute.xlu0 %514  ;;  %vm551_vm10 = vmand %vm1519_vm9, %vm1493_vm0  ;;  %vm1719_vm0 = vcmp.ne.s32.totalorder %v1404_v59, 0 }
 0x56c   : > { %vm518_vm14 = vcmp.eq.s32.totalorder %v1402_v58, %v515_v54  ;;  %vm519_vm3 = vcmp.eq.s32.totalorder %v1404_v59, %v515_v54  ;;  %vm552_vm8 = vmand %vm1531_vm5, %vm1718_vm12 }
 0x56d   : > { %vm522_vm6 = vmor %vm505_vm4, %vm518_vm14 }
 0x56e   : > { %vm523_vm13 = vmor %vm506_vm2, %vm519_vm3 }
 0x56f   : > { %vm539_vm9 = vmor %vm522_vm6, %vm535_vm7 }
 0x570   : > { %vm550_vm4 = vmand %vm1719_vm0, %vm1514_vm11 }
 0x571   : > { %vm540_vm14 = vmor %vm523_vm13, %vm536_vm15 }
 0x572   : > { %vm553_vm5 = vmand %vm539_vm9, %vm1527_vm1 }
 0x573   : > { %v1008_v60 = vpop.eup %1007  ;;  %vm554_vm2 = vmand %vm540_vm14, %vm550_vm4 }
 0x574   : > { %v1010_v1 = vpop.eup %1009  ;;  %v589_v2 = vmul.f32 0.6931472, %v1008_v60 }
 0x575   : > { %v591_v3 = vmul.f32 0.6931472, %v1010_v1 }
 0x576   : > { %v596_v4 = vsub.f32 0.0, %v589_v2 }
 0x577   : > { %v1012_v5 = vpop.eup %1011  ;;  %v597_v11 = vsub.f32 0.0, %v591_v3 }
 0x578   : > { %v1014_v12 = vpop.eup %1013  ;;  %v600_v13 = vsel %vm551_vm10, %v596_v4, 0.0  ;;  %v593_v8 = vmul.f32 0.6931472, %v1012_v5 }
 0x579   : > { %v601_v9 = vsel %vm552_vm8, %v597_v11, 0.0  ;;  %v595_v58 = vmul.f32 0.6931472, %v1014_v12 }
 0x57a   : > { %v598_v14 = vsub.f32 0.0, %v593_v8  ;;  %v604_v16 = vadd.f32 %v601_v9, %v600_v13 }
 0x57b   : > { %v599_v15 = vsub.f32 0.0, %v595_v58 }
 0x57c   : > { %v602_v17 = vsel %vm553_vm5, %v598_v14, 0.0 }
 0x57d   : > { %v605_v18 = vadd.f32 %v604_v16, %v602_v17  ;;  %v603_v19 = vsel %vm554_vm2, %v599_v15, 0.0 }
 0x57f   : > { %v606_v20 = vadd.f32 %v605_v18, %v603_v19 }
 0x581   : > { %607 = vadd.xlane.f32.xlu0 %v606_v20 }
 0x60a   : > { %v608_v21 = vpop.xlane.xlu0 %607 }
 0x60b   : > { %v609_v22 = vrot.slane %v608_v21, 4 }
 0x60d   : > { %v610_v59 = vadd.f32 %v609_v22, %v608_v21 }
 0x60f   : > { %v611_v23 = vrot.slane %v610_v59, 2 }
 0x611   : > { %v612_v24 = vadd.f32 %v611_v23, %v610_v59 }
 0x613   : > { %v613_v25 = vrot.slane %v612_v24, 1 }
 0x615   : > { %v614_v26 = vadd.f32 %v613_v25, %v612_v24 }
 0x617   : > { %852 = vpush %v614_v26 }
 0x648   : > { %s853_s29 = spop %852 }
 0x649   : > { %v616_v28 = vstv %s853_s29 }
 0x64a   : > { %v617_v29 = vadd.f32 %v616_v28, %v587_v27 }
 0x64c   : > { %618 = vst [vmem:[%s1370_s9] sm:$0x1] %v617_v29 }
 0x64d PF: > { %s1720_s5 = sadd.s32 4294967295, %s1195_s26   ;;  %s1560_s7 = sshll.u32 %s1179_s22, 4 }
 0x64e   : > { %s1557_s6 = sand.u32 1, %s1720_s5   ;;  %s1721_s3 = sld [smem:[#allocation19_spill]] }
 0x64f   : > { %s653_s27 = sshll.u32 %s1367_s18, 4  ;;  %s1573_s29 = scalar_lea.hbm %s1681_s2, %s1560_s7  ;;  %s654_s27 = int_to_ptr.vmem [resolvable:$true] %s653_s27 }
 0x650   : > { %s1015_s5 = scalar_lea.vmem %s654_s27, 16  ;;  %s1203_s22 = smov [#allocation7]  }
 0x651   : > { %p1016_p13 = scmp.ne.s32.totalorder %s654_s27, %s1015_s5  ;;  %s1019_s1 = sshll.u32 %s1203_s22, 4  ;;  %s1020_s1 = int_to_ptr.vmem [resolvable:$false] %s1019_s1 }
 0x652   : > { %s1021_s11 = scalar_lea.vmem %s1020_s1, 32  ;;  %p1022_p2 = scmp.lt.s32.totalorder %s654_s27, %s1020_s1 }
 0x653   : > { %p1017_p0 = pnand %p1016_p13, %p1319_p10  ;;  %p1023_p3 = scmp.lt.s32.totalorder %s1021_s11, %s1015_s5 }
 0x654   : > { %s1566_s21 = scalar_lea.hbm %s1721_s3, %s1560_s7 }
 0x655   : > { %p1018_p1 = pneg %p1017_p0  ;;  %p1024_p4 = por %p1023_p3, %p1022_p2 }
 0x657   : > { %p1025_p5 = pnand %p1024_p4, %p1018_p1 }
 0x659   : > { %1028 = shalt.err (!%p1025_p5)
}
 0x65a   : > { %s1029_s18 = scalar_lea.hbm %s1566_s21, 16  ;;  %s1033_s24 = scalar_lea.hbm %s1721_s3, 32 }
 0x65b   : > { %p1030_p6 = scmp.ne.s32.totalorder %s1566_s21, %s1029_s18  ;;  %p1034_p9 = scmp.lt.s32.totalorder %s1566_s21, %s1721_s3 }
 0x65c   : > { %p1035_p12 = scmp.lt.s32.totalorder %s1033_s24, %s1029_s18 }
 0x65d   : > { %p1031_p7 = pnand %p1030_p6, %p1319_p10 }
 0x65e   : > { %p1036_p13 = por %p1035_p12, %p1034_p9 }
 0x65f   : > { %p1032_p8 = pneg %p1031_p7 }
 0x661   : > { %p1037_p0 = pnand %p1036_p13, %p1032_p8 }
 0x663   : > { %1040 = shalt.err (!%p1037_p0)
}
 0x664   : > { %s1722_s1 = scalar_lea.sflag [#allocation8], %s1557_s6  ;;  %s640_s5 = sshll.u32 %s1364_s12, 4  ;;  %s641_s5 = int_to_ptr.vmem [resolvable:$true] %s640_s5 }
 0x665   : > { %855 = dma.vmem_to_hbm [thread:$0]  (%p1319_p10), %s654_s27, 16, %s1566_s21, %s1722_s1  }
 0x666   : > { %s1599_s0 = scalar_lea.hbm %s1683_s4, %s1560_s7  ;;  %s666_s18 = sshll.u32 %s1370_s9, 4  ;;  %s667_s18 = int_to_ptr.vmem [resolvable:$true] %s666_s18 }
 0x667   : > { %s620_s20 = scalar_lea.sflag [#allocation6], %s1352_s28  ;;  %s1041_s24 = scalar_lea.vmem %s641_s5, 16 }
 0x668   : > { %p1042_p1 = scmp.ne.s32.totalorder %s641_s5, %s1041_s24  ;;  %s1204_s22 = smov [#allocation5]  }
 0x669   : > { %s1045_s3 = sshll.u32 %s1204_s22, 4  ;;  %s1046_s3 = int_to_ptr.vmem [resolvable:$false] %s1045_s3 }
 0x66a   : > { %p1043_p2 = pnand %p1042_p1, %p1319_p10  ;;  %s1047_s25 = scalar_lea.vmem %s1046_s3, 32 }
 0x66b   : > { %p1048_p4 = scmp.lt.s32.totalorder %s641_s5, %s1046_s3  ;;  %p1049_p5 = scmp.lt.s32.totalorder %s1047_s25, %s1041_s24 }
 0x66c   : > { %p1044_p3 = pneg %p1043_p2 }
 0x66d   : > { %p1050_p6 = por %p1049_p5, %p1048_p4 }
 0x66f   : > { %p1051_p7 = pnand %p1050_p6, %p1044_p3 }
 0x671   : > { %1054 = shalt.err (!%p1051_p7)
}
 0x672   : > { %s1055_s12 = scalar_lea.hbm %s1573_s29, 16  ;;  %s1059_s7 = scalar_lea.hbm %s1681_s2, 32 }
 0x673   : > { %p1056_p8 = scmp.ne.s32.totalorder %s1573_s29, %s1055_s12  ;;  %p1060_p13 = scmp.lt.s32.totalorder %s1573_s29, %s1681_s2 }
 0x674   : > { %p1061_p0 = scmp.lt.s32.totalorder %s1059_s7, %s1055_s12 }
 0x675   : > { %p1057_p9 = pnand %p1056_p8, %p1319_p10 }
 0x676   : > { %p1062_p1 = por %p1061_p0, %p1060_p13 }
 0x677   : > { %p1058_p12 = pneg %p1057_p9 }
 0x679   : > { %p1063_p2 = pnand %p1062_p1, %p1058_p12 }
 0x67b   : > { %1066 = shalt.err (!%p1063_p2)
}
 0x67c   : > { %854 = dma.vmem_to_hbm [thread:$0]  (%p1319_p10), %s641_s5, 16, %s1573_s29, %s620_s20  }
 0x67d   : > { %s1067_s3 = scalar_lea.vmem %s667_s18, 16  ;;  %s1205_s25 = smov [#allocation9]  }
 0x67e   : > { %p1068_p3 = scmp.ne.s32.totalorder %s667_s18, %s1067_s3  ;;  %s1071_s1 = sshll.u32 %s1205_s25, 4  ;;  %s1072_s1 = int_to_ptr.vmem [resolvable:$false] %s1071_s1 }
 0x67f   : > { %s1073_s11 = scalar_lea.vmem %s1072_s1, 32  ;;  %p1074_p6 = scmp.lt.s32.totalorder %s667_s18, %s1072_s1 }
 0x680   : > { %p1069_p4 = pnand %p1068_p3, %p1319_p10  ;;  %p1075_p7 = scmp.lt.s32.totalorder %s1073_s11, %s1067_s3 }
 0x682   : > { %p1070_p5 = pneg %p1069_p4  ;;  %p1076_p8 = por %p1075_p7, %p1074_p6 }
 0x684   : > { %p1077_p9 = pnand %p1076_p8, %p1070_p5 }
 0x686   : > { %1080 = shalt.err (!%p1077_p9)
}
 0x687   : > { %s1081_s29 = scalar_lea.hbm %s1599_s0, 16  ;;  %s1085_s20 = scalar_lea.hbm %s1683_s4, 32 }
 0x688   : > { %p1082_p12 = scmp.ne.s32.totalorder %s1599_s0, %s1081_s29  ;;  %p1086_p1 = scmp.lt.s32.totalorder %s1599_s0, %s1683_s4 }
 0x689   : > { %p1087_p2 = scmp.lt.s32.totalorder %s1085_s20, %s1081_s29 }
 0x68a   : > { %p1083_p13 = pnand %p1082_p12, %p1319_p10 }
 0x68b   : > { %p1088_p3 = por %p1087_p2, %p1086_p1 }
 0x68c   : > { %p1084_p0 = pneg %p1083_p13 }
 0x68e   : > { %p1089_p4 = pnand %p1088_p3, %p1084_p0 }
 0x690   : > { %1092 = shalt.err (!%p1089_p4)
}
 0x691   : > { %s1723_s12 = scalar_lea.sflag [#allocation8], %s1557_s6 }
 0x692   : > { %856 = dma.vmem_to_hbm [thread:$0]  (%p1319_p10), %s667_s18, 16, %s1599_s0, %s1723_s12  }
 0x693 PF: > { %p870_p5 = scmp.ge.s32.totalorder %s1195_s26, 2  ;;  %s678_s28 = sand.u32 1, %s1151_s15  }
 0x694   : > { %s679_s9 = scalar_lea.sflag [#allocation6], %s678_s28 }
 0x695   : > { %p861_p6 = pnand %p870_p5, %p1326_p11 }
 0x697   : > { %p862_p7 = pneg %p861_p6 }
 0x699   : > { %1142 = dma.done.wait (%p862_p7), %s679_s9, 16  }
 0x69a   : > { %1144 = vsyncadd (%p862_p7), %s679_s9, 4294967280  ;;  %s1724_s7 = sadd.s32 4294967294, %s1195_s26  }
 0x69b   : > { %s686_s21 = sand.u32 1, %s1724_s7  }
 0x69c   : > { %s687_s8 = scalar_lea.sflag [#allocation8], %s686_s21 }
 0x69d   : > { %1146 = dma.done.wait (%p862_p7), %s687_s8, 32  }
 0x69e   : > { %1148 = vsyncadd (%p862_p7), %s687_s8, 4294967264  ;;  %s21_s26 = sadd.s32 1, %s1195_s26   ;;  %s1725_s21 = sld [smem:[#allocation12_spill]] }
 0x69f   : > { %p18_p10 = scmp.ge.s32.totalorder %s21_s26, 10   ;;  %s1726_s22 = sld [smem:[#allocation13_spill]] }
 0x6a0   : > { %s1727_s10 = sld [smem:[#allocation14_spill]]  ;;  %s1730_s15 = smov %s1155_s16 }
 0x6a1   : > { %s1728_s24 = sld [smem:[#allocation15_spill]]  ;;  %s1731_s16 = smov %s1159_s17 }
 0x6a2   : > { %s1729_s25 = sld [smem:[#allocation16_spill]]  ;;  %s1732_s17 = smov %s1334_s14 }
 0x6a3   : > { %s1733_s18 = smov %s1167_s19  ;;  %s1734_s19 = smov %s1337_s30 }
 0x6a4   : > { %s1735_s20 = smov %s1183_s23  ;;  %20 = sbr.rel (!%p18_p10) target bundleno = 13 (0xd), region = 145 }
 0x6a6   : > { %s1736_s23 = smov %s1727_s10 }
 0x6a9   :  { %699 = vsyncpa [#allocation6], 1 }
 0x6aa   :  { %701 = vsyncpa [#allocation6 + $0x1], 1 }
 0x6ab   :  { %702 = vsyncpa [#allocation8], 1 }
 0x6ac   :  { %704 = vsyncpa [#allocation8 + $0x1], 1 }

</bundles_post_ra>
